<compile_context>
chip_gen: v7x
topology: tpu7x:2x2x1
jax: 0.10.0
libtpu: 0.0.40
codegen_flags: <defaults>
</compile_context>

<pallas_src>
import jax
import jax.numpy as jnp
from jax.experimental import pallas as pl
from jax.experimental.pallas import tpu as pltpu


def _round_up(a, b):
    return (a + b - 1) // b * b


def _vmem_budget_bytes():
    # ~48 MiB on v7x (64 MiB per TensorCore), ~96 MiB on v5e/v6e (128 MiB).
    try:
        cap = pltpu.get_tpu_info().vmem_capacity_bytes
    except Exception:
        cap = 64 * 1024 * 1024  # assume smallest generation if query fails
    return min(int(cap * 3 // 4), 96 * 1024 * 1024)


# ---------------------------------------------------------------------------
# Kernel 1: LoRA down-projection   z = x @ w_a   (rank padded to 128 lanes)
#   w_a is pre-transposed to (K_pad, R_pad) so the dot is a plain (M,K)@(K,R).
# ---------------------------------------------------------------------------
def _lora_down_kernel(x_ref, wa_ref, z_ref, acc_ref):
    k = pl.program_id(1)

    @pl.when(k == 0)
    def _():
        acc_ref[...] = jnp.zeros_like(acc_ref)

    acc_ref[...] += jnp.dot(x_ref[...], wa_ref[...],
                            preferred_element_type=jnp.float32)

    @pl.when(k == pl.num_programs(1) - 1)
    def _():
        z_ref[...] = acc_ref[...].astype(z_ref.dtype)


# ---------------------------------------------------------------------------
# Kernel 2: fused base GEMM + bias + LoRA up-projection
#   o = x @ w + b + z @ w_b     (w pre-transposed to (K,N), w_b to (R,N))
#   o_ref's block index is k-invariant -> the f32 output tile stays resident
#   in VMEM across the K axis and doubles as the accumulator (no scratch).
# ---------------------------------------------------------------------------
def _lora_main_kernel(x_ref, w_ref, b_ref, z_ref, wb_ref, o_ref):
    k = pl.program_id(2)

    @pl.when(k == 0)
    def _():
        o_ref[...] = jnp.zeros_like(o_ref)

    o_ref[...] += jnp.dot(x_ref[...], w_ref[...],
                          preferred_element_type=jnp.float32)

    @pl.when(k == pl.num_programs(2) - 1)
    def _():
        lora = jnp.dot(z_ref[...], wb_ref[...],
                       preferred_element_type=jnp.float32)
        o_ref[...] += b_ref[...] + lora


def prepare_lora_params(w, b, w_a, w_b, *, tn=2048, tk=1024):
    """One-time (init) cast / pad / transpose of the frozen parameters.

    w: (out_f, in_f), b: (out_f,), w_a: (r, in_f), w_b: (out_f, r).
    Returns a dict of bf16, pre-transposed, tile-padded device arrays plus the
    static tiling metadata, so the per-call forward does no weight
    preprocessing in HBM.
    """
    out_f, in_f = w.shape
    r = w_a.shape[0]
    cdt = jnp.bfloat16  # MXU-native operand dtype; accumulation stays f32.

    TN = min(tn, _round_up(out_f, 128))
    TK = min(tk, _round_up(in_f, 128))
    N_pad = _round_up(out_f, TN)
    K_pad = _round_up(in_f, TK)
    R_pad = _round_up(r, 128)

    # Pre-transpose (weights are static) so every in-kernel dot is a plain
    # (M,K)@(K,N) contraction -> no per-grid-step transposes of weight tiles.
    w_t = jnp.pad(w.astype(cdt).T, ((0, K_pad - in_f), (0, N_pad - out_f)))
    wa_t = jnp.pad(w_a.astype(cdt).T, ((0, K_pad - in_f), (0, R_pad - r)))
    wb_t = jnp.pad(w_b.astype(cdt).T, ((0, R_pad - r), (0, N_pad - out_f)))
    b_p = jnp.pad(b.astype(jnp.float32), (0, N_pad - out_f)).reshape(1, N_pad)

    return dict(w=w_t, b=b_p, w_a=wa_t, w_b=wb_t,
                out_f=out_f, in_f=in_f, r=r,
                TN=TN, TK=TK, N_pad=N_pad, K_pad=K_pad, R_pad=R_pad)


def lora_forward(x, params, *, tm=1024):
    """x: (batch, seq, in_f). Returns f32 (batch, seq, out_f)."""
    out_f, in_f = params["out_f"], params["in_f"]
    TN, TK = params["TN"], params["TK"]
    N_pad, K_pad, R_pad = params["N_pad"], params["K_pad"], params["R_pad"]

    batch, seq, _ = x.shape
    M = batch * seq

    TM = min(tm, _round_up(M, 8))
    M_pad = _round_up(M, TM)

    # Activations: bf16 + zero-pad to tile multiples (zeros add nothing).
    x2d = jnp.pad(x.reshape(M, in_f).astype(jnp.bfloat16),
                  ((0, M_pad - M), (0, K_pad - in_f)))

    vmem_limit = _vmem_budget_bytes()

    # --- down-projection: z = x @ w_a -> (M_pad, R_pad) bf16 ----------------
    z = pl.pallas_call(
        _lora_down_kernel,
        out_shape=jax.ShapeDtypeStruct((M_pad, R_pad), jnp.bfloat16),
        grid_spec=pltpu.PrefetchScalarGridSpec(
            num_scalar_prefetch=0,
            grid=(M_pad // TM, K_pad // TK),
            in_specs=[
                pl.BlockSpec((TM, TK), lambda i, k: (i, k)),       # x
                pl.BlockSpec((TK, R_pad), lambda i, k: (k, 0)),    # w_a^T
            ],
            out_specs=pl.BlockSpec((TM, R_pad), lambda i, k: (i, 0)),
            scratch_shapes=[pltpu.VMEM((TM, R_pad), jnp.float32)],
        ),
        compiler_params=pltpu.CompilerParams(
            dimension_semantics=("parallel", "arbitrary"),
            vmem_limit_bytes=vmem_limit,
        ),
    )(x2d, params["w_a"])

    # --- fused base GEMM + bias + LoRA up-projection -------------------------
    out = pl.pallas_call(
        _lora_main_kernel,
        out_shape=jax.ShapeDtypeStruct((M_pad, N_pad), jnp.float32),
        grid_spec=pltpu.PrefetchScalarGridSpec(
            num_scalar_prefetch=0,
            grid=(M_pad // TM, N_pad // TN, K_pad // TK),
            in_specs=[
                pl.BlockSpec((TM, TK), lambda i, j, k: (i, k)),     # x
                pl.BlockSpec((TK, TN), lambda i, j, k: (k, j)),     # w^T
                pl.BlockSpec((1, TN), lambda i, j, k: (0, j)),      # bias
                pl.BlockSpec((TM, R_pad), lambda i, j, k: (i, 0)),  # z
                pl.BlockSpec((R_pad, TN), lambda i, j, k: (0, j)),  # w_b^T
            ],
            out_specs=pl.BlockSpec((TM, TN), lambda i, j, k: (i, j)),
        ),
        compiler_params=pltpu.CompilerParams(
            # z is precomputed, so M- and N-tile axes are fully independent
            # ("parallel" -> megacore sharding on v7x); K is the reduction.
            dimension_semantics=("parallel", "parallel", "arbitrary"),
            vmem_limit_bytes=vmem_limit,
        ),
    )(x2d, params["w"], params["b"], z, params["w_b"])

    return out[:M, :out_f].reshape(batch, seq, out_f)


if __name__ == "__main__":
    # Small shapes implied by the module: a linear LoRA over a token stream.
    batch, seq, in_f, out_f, r = 2, 8, 32, 32, 4

    key = jax.random.PRNGKey(0)
    kx, kw, kbias, ka, kb2 = jax.random.split(key, 5)

    x = jax.random.normal(kx, (batch, seq, in_f), dtype=jnp.float32)
    # Deterministic synthetic parameters; real LoRA inits w_b to zero, but we
    # use nonzero values so the LoRA path is actually exercised.
    w = jax.random.normal(kw, (out_f, in_f), dtype=jnp.float32) * (1.0 / in_f ** 0.5)
    b = jax.random.normal(kbias, (out_f,), dtype=jnp.float32) * 0.1
    w_a = jax.random.normal(ka, (r, in_f), dtype=jnp.float32) * (1.0 / in_f ** 0.5)
    w_b = jax.random.normal(kb2, (out_f, r), dtype=jnp.float32) * (1.0 / r ** 0.5)

    params = prepare_lora_params(w, b, w_a, w_b)   # one-time init-cost cast/pad
    out = lora_forward(x, params)
    out = jax.block_until_ready(out)

    # Pure-JAX reference with the same bf16 operand rounding the kernels use
    # (f32 accumulation), so the comparison is tight.
    xb = x.astype(jnp.bfloat16).astype(jnp.float32)
    wb16 = w.astype(jnp.bfloat16).astype(jnp.float32)
    wab = w_a.astype(jnp.bfloat16).astype(jnp.float32)
    wbb = w_b.astype(jnp.bfloat16).astype(jnp.float32)
    base = jnp.einsum("bsi,oi->bso", xb, wb16) + b
    z_ref = jnp.einsum("bsi,ri->bsr", xb, wab)
    z_ref = z_ref.astype(jnp.bfloat16).astype(jnp.float32)  # kernel stores z in bf16
    ref = base + jnp.einsum("bsr,or->bso", z_ref, wbb)

    assert out.shape == (batch, seq, out_f)
    err = float(jnp.max(jnp.abs(out - ref)))
    assert jnp.allclose(out, ref, atol=1e-2, rtol=1e-2), err

    print("KERNEL_OK")
</pallas_src>

<mosaic_0001>
module attributes {stable_mosaic.version = 11 : i64} {
  func.func @_lora_down_kernel(%arg0: i32, %arg1: i32, %arg2: memref<16x128xbf16, #tpu.memory_space<vmem>>, %arg3: memref<128x128xbf16, #tpu.memory_space<vmem>>, %arg4: memref<16x128xbf16, #tpu.memory_space<vmem>>, %arg5: memref<16x128xf32, #tpu.memory_space<vmem>>) attributes {dimension_semantics = [#tpu.dimension_semantics<parallel>, #tpu.dimension_semantics<arbitrary>], iteration_bounds = array<i64: 1, 1>, scalar_prefetch = 0 : i64, scratch_operands = 1 : i64, tpu.core_type = #tpu.core_type<tc>, window_params = [{transform_indices = @transform_0, window_bounds = array<i64: 16, 128>}, {transform_indices = @transform_1, window_bounds = array<i64: 128, 128>}, {transform_indices = @transform_2, window_bounds = array<i64: 16, 128>}]} {
    %c0_i32 = arith.constant 0 : i32
    %0 = arith.cmpi eq, %arg1, %c0_i32 : i32
    %1 = arith.extui %0 : i1 to i32
    %c0_i32_0 = arith.constant 0 : i32
    %2 = arith.cmpi ne, %1, %c0_i32_0 : i32
    scf.if %2 {
      %cst_10 = arith.constant 0.000000e+00 : f32
      %12 = vector.broadcast %cst_10 : f32 to vector<16x128xf32>
      %c0_11 = arith.constant 0 : index
      %c0_12 = arith.constant 0 : index
      %13 = vector.load %arg5[%c0_11, %c0_12] : memref<16x128xf32, #tpu.memory_space<vmem>>, vector<16x128xf32>
      tpu.vector_store %arg5[%c0_11, %c0_12], %12 {strides = array<i32>} : memref<16x128xf32, #tpu.memory_space<vmem>>, vector<16x128xf32>,
    } else {
    }
    %c0 = arith.constant 0 : index
    %c0_1 = arith.constant 0 : index
    %3 = vector.load %arg5[%c0, %c0_1] : memref<16x128xf32, #tpu.memory_space<vmem>>, vector<16x128xf32>
    %c0_2 = arith.constant 0 : index
    %c0_3 = arith.constant 0 : index
    %4 = vector.load %arg2[%c0_2, %c0_3] : memref<16x128xbf16, #tpu.memory_space<vmem>>, vector<16x128xbf16>
    %c0_4 = arith.constant 0 : index
    %c0_5 = arith.constant 0 : index
    %5 = vector.load %arg3[%c0_4, %c0_5] : memref<128x128xbf16, #tpu.memory_space<vmem>>, vector<128x128xbf16>
    %cst = arith.constant dense<0.000000e+00> : vector<16x128xf32>
    %6 = tpu.matmul %4, %5, %cst {dimension_numbers = #tpu.dot_dimension_numbers<[1], [0], [0], [1], [0, 0, 1, 1], [], []>} : vector<16x128xbf16>, vector<128x128xbf16>, vector<16x128xf32> -> vector<16x128xf32>
    %7 = arith.addf %3, %6 : vector<16x128xf32>
    %c0_6 = arith.constant 0 : index
    %c0_7 = arith.constant 0 : index
    %8 = vector.load %arg5[%c0_6, %c0_7] : memref<16x128xf32, #tpu.memory_space<vmem>>, vector<16x128xf32>
    tpu.vector_store %arg5[%c0_6, %c0_7], %7 {strides = array<i32>} : memref<16x128xf32, #tpu.memory_space<vmem>>, vector<16x128xf32>,
    %c0_i32_8 = arith.constant 0 : i32
    %9 = arith.cmpi eq, %arg1, %c0_i32_8 : i32
    %10 = arith.extui %9 : i1 to i32
    %c0_i32_9 = arith.constant 0 : i32
    %11 = arith.cmpi ne, %10, %c0_i32_9 : i32
    scf.if %11 {
      %c0_10 = arith.constant 0 : index
      %c0_11 = arith.constant 0 : index
      %12 = vector.load %arg5[%c0_10, %c0_11] : memref<16x128xf32, #tpu.memory_space<vmem>>, vector<16x128xf32>
      %13 = arith.truncf %12 : vector<16x128xf32> to vector<16x128xbf16>
      %c0_12 = arith.constant 0 : index
      %c0_13 = arith.constant 0 : index
      %14 = vector.load %arg4[%c0_12, %c0_13] : memref<16x128xbf16, #tpu.memory_space<vmem>>, vector<16x128xbf16>
      tpu.vector_store %arg4[%c0_12, %c0_13], %13 {strides = array<i32>} : memref<16x128xbf16, #tpu.memory_space<vmem>>, vector<16x128xbf16>,
    } else {
    }
    return
  }
  func.func @transform_0(%arg0: i32, %arg1: i32) -> (i32, i32) {
    %c0_i32 = arith.constant 0 : i32
    return %arg0, %arg1 : i32, i32
  }
  func.func @transform_1(%arg0: i32, %arg1: i32) -> (i32, i32) {
    %c0_i32 = arith.constant 0 : i32
    %c0_i32_0 = arith.constant 0 : i32
    return %arg1, %c0_i32 : i32, i32
  }
  func.func @transform_2(%arg0: i32, %arg1: i32) -> (i32, i32) {
    %c0_i32 = arith.constant 0 : i32
    %c0_i32_0 = arith.constant 0 : i32
    return %arg0, %c0_i32 : i32, i32
  }
}

</mosaic_0001>

<bundles_post_ra>
// kernel: tpu_custom_call.1
= control target key start
LH: loop header
LB: loop body
LE: loop exit
PB: predicated region body
PF: predicated region fallthrough
CT: control target
= control target key end

     0   :  { %7 = vsyncpa [#allocation4], 0  ;;  %s401_s0 = inlined_call_operand.hbm [shape: bf16[16,128], index: 0, kind: input, shape index: {}]   ;;  %s402_s1 = inlined_call_operand.hbm [shape: bf16[128,128], index: 1, kind: input, shape index: {}]   ;;  %s403_s2 = inlined_call_operand.hbm [shape: bf16[16,128], index: 2, kind: output, shape index: {}]  }
   0x1   :  { %8 = vsyncpa [#allocation7], 0 }
   0x2   :  { %9 = vsyncpa [#allocation5], 0  ;;  %s334_s9 = smov [#allocation3]   ;;  %s262_s13 = scalar_lea.hbm %s401_s0, 128 }
   0x3   :  { %s15_s10 = sshll.u32 %s334_s9, 4  ;;  %p263_p0 = scmp.ne.s32.totalorder %s401_s0, %s262_s13  ;;  %s16_s10 = int_to_ptr.vmem [resolvable:$true] %s15_s10 }
   0x4   :  { %p266_p1 = scmp.lt.u32.totalorder %s262_s13, %s401_s0 }
   0x6   :  { %p268_p2 = pnand %p266_p1, %p263_p0 }
   0x8   :  { %271 = shalt.err (!%p268_p2)
}
   0x9   :  { %s272_s18 = scalar_lea.vmem %s16_s10, 128  ;;  %p277_p4 = scmp.lt.s32.totalorder %s16_s10, %s16_s10 }
   0xa   :  { %p273_p3 = scmp.ne.s32.totalorder %s16_s10, %s272_s18  ;;  %p278_p5 = scmp.lt.s32.totalorder %s272_s18, %s272_s18 }
   0xc   :  { %p279_p6 = por %p278_p5, %p277_p4 }
   0xe   :  { %p280_p7 = pnand %p279_p6, %p273_p3 }
  0x10   :  { %283 = shalt.err (!%p280_p7)
}
  0x11   :  { %s335_s19 = smov 64   ;;  %s336_s20 = smov 4  }
  0x12   :  { %21 = dma.hbm_to_vmem [thread:$0]  %s401_s0, 128, %s16_s10, [#allocation4], %s335_s19, %s335_s19, %s336_s20  }
  0x13   :  { %s337_s23 = smov [#allocation6]   ;;  %s284_s27 = scalar_lea.hbm %s402_s1, 1024 }
  0x14   :  { %s27_s24 = sshll.u32 %s337_s23, 4  ;;  %p285_p8 = scmp.ne.s32.totalorder %s402_s1, %s284_s27  ;;  %s28_s24 = int_to_ptr.vmem [resolvable:$true] %s27_s24 }
  0x15   :  { %p288_p9 = scmp.lt.u32.totalorder %s284_s27, %s402_s1 }
  0x17   :  { %p290_p10 = pnand %p288_p9, %p285_p8 }
  0x19   :  { %293 = shalt.err (!%p290_p10)
}
  0x1a   :  { %s294_s4 = scalar_lea.vmem %s28_s24, 1024  ;;  %p299_p12 = scmp.lt.s32.totalorder %s28_s24, %s28_s24 }
  0x1b   :  { %p295_p11 = scmp.ne.s32.totalorder %s28_s24, %s294_s4  ;;  %p300_p13 = scmp.lt.s32.totalorder %s294_s4, %s294_s4 }
  0x1d   :  { %p301_p0 = por %p300_p13, %p299_p12 }
  0x1f   :  { %p302_p1 = pnand %p301_p0, %p295_p11 }
  0x21   :  { %305 = shalt.err (!%p302_p1)
}
  0x22   :  { %33 = dma.hbm_to_vmem [thread:$0]  %s402_s1, 1024, %s28_s24, [#allocation7], %s335_s19, %s335_s19, %s336_s20  }
  0x23   :  { %328 = dma.done.wait [#allocation4], 128  }
  0x24   :  { %329 = vsyncadd [#allocation4], 4294967168 }
  0x25   :  { %330 = dma.done.wait [#allocation7], 1024  }
  0x26   :  { %331 = vsyncadd [#allocation7], 4294966272  ;;  %v338_v0 = vmov 0.0   ;;  %vm339_vm0 = vmmov 0   ;;  %v253_v1 = vld [vmem:[#allocation6] sm:$0xff]   ;;  %v254_v2 = vld [vmem:[#allocation6 + $0x8] sm:$0xff]  }
  0x27   :  { %226 = vmatprep.subr.bf16.mxu0 %v338_v0  ;;  %242 = vmatprep.mubr.msk.bf16.mxu0 %vm339_vm0, %v338_v0  ;;  %v255_v3 = vld [vmem:[#allocation6 + $0x10] sm:$0xff]   ;;  %v256_v4 = vld [vmem:[#allocation6 + $0x18] sm:$0xff]   ;;  %v257_v5 = vld [vmem:[#allocation6 + $0x20] sm:$0xff]   ;;  %s340_s1 = smov [#allocation8]  }
  0x28   :  { %227 = vmatpush3.bf16.msra.mxu0 %v253_v1  ;;  %v258_v6 = vld [vmem:[#allocation6 + $0x28] sm:$0xff]   ;;  %v259_v7 = vld [vmem:[#allocation6 + $0x30] sm:$0xff]   ;;  %v260_v8 = vld [vmem:[#allocation6 + $0x38] sm:$0xff]   ;;  %s186_s6 = sshll.u32 %s340_s1, 4  ;;  %s187_s6 = int_to_ptr.vmem [resolvable:$true] %s186_s6 }
  0x29   :  { %228 = vmatprep.subr.bf16.mxu0 %v338_v0  ;;  %v261_v9 = vld [vmem:[#allocation3] sm:$0xff]   ;;  %s306_s7 = scalar_lea.vmem %s187_s6, 128  ;;  %p311_p3 = scmp.lt.s32.totalorder %s187_s6, %s187_s6 }
  0x2a   :  { %p307_p2 = scmp.ne.s32.totalorder %s187_s6, %s306_s7  ;;  %p312_p4 = scmp.lt.s32.totalorder %s306_s7, %s306_s7 }
  0x2c   :  { %229 = vmatpush3.bf16.msra.mxu0 %v254_v2  ;;  %p313_p5 = por %p312_p4, %p311_p3 }
  0x2d   :  { %230 = vmatprep.subr.bf16.mxu0 %v338_v0 }
  0x2e   :  { %p314_p6 = pnand %p313_p5, %p307_p2 }
  0x30   :  { %231 = vmatpush3.bf16.msra.mxu0 %v255_v3 }
  0x31   :  { %232 = vmatprep.subr.bf16.mxu0 %v338_v0 }
  0x34   :  { %233 = vmatpush3.bf16.msra.mxu0 %v256_v4 }
  0x35   :  { %234 = vmatprep.subr.bf16.mxu0 %v338_v0 }
  0x38   :  { %235 = vmatpush3.bf16.msra.mxu0 %v257_v5 }
  0x39   :  { %236 = vmatprep.subr.bf16.mxu0 %v338_v0 }
  0x3c   :  { %237 = vmatpush3.bf16.msra.mxu0 %v258_v6 }
  0x3d   :  { %238 = vmatprep.subr.bf16.mxu0 %v338_v0 }
  0x40   :  { %239 = vmatpush3.bf16.msra.mxu0 %v259_v7 }
  0x41   :  { %240 = vmatprep.subr.bf16.mxu0 %v338_v0 }
  0x44   :  { %241 = vmatpush3.bf16.msra.mxu0 %v260_v8 }
  0x47   :  { %243 = vmatmul.mubr.bf16.vlgmr.msra.gmra.mrb[0].mxu0 %v261_v9 }
 0x11a   :  { %v155_v10 = vpop.f32.mrb[0].mxu0 }
 0x11b   :  { %v244_v11 = vpop.f32.mrb[1].mxu0 }
 0x11c   :  { %v158_v12 = vpop.f32.mrb[2].mxu0 }
 0x11d   :  { %v215_v13 = vpack.c.bf16 %v158_v12, %v155_v10  ;;  %v245_v14 = vpop.f32.mrb[3].mxu0 }
 0x11f   :  { %216 = vst [vmem:[#allocation8] sm:$0xff] %v215_v13  }
 0x120   :  { %317 = shalt.err (!%p314_p6)
}
 0x121   :  { %s318_s10 = scalar_lea.hbm %s403_s2, 128 }
 0x122   :  { %p319_p7 = scmp.ne.s32.totalorder %s403_s2, %s318_s10  ;;  %p322_p8 = scmp.lt.u32.totalorder %s318_s10, %s403_s2 }
 0x124   :  { %p324_p9 = pnand %p322_p8, %p319_p7 }
 0x126   :  { %327 = shalt.err (!%p324_p9)
}
 0x127   :  { %192 = dma.vmem_to_hbm [thread:$0]  %s187_s6, 128, %s403_s2, [#allocation5], %s335_s19, %s335_s19, %s336_s20  }
 0x128   :  { %332 = dma.done.wait [#allocation5], 128  }
 0x129   :  { %333 = vsyncadd [#allocation5], 4294967168 }
 0x12a   :  { %196 = vsyncpa [#allocation4], 1 }
 0x12b   :  { %197 = vsyncpa [#allocation7], 1 }
 0x12c   :  { %198 = vsyncpa [#allocation5], 1 }

</bundles_post_ra>
